<compile_context>
chip_gen: v5e
topology: v5e:2x2
jax: 0.10.0
libtpu: 0.0.40
codegen_flags: <defaults>
</compile_context>

<pallas_src>
import functools

import jax
import jax.numpy as jnp
from jax.experimental import pallas as pl
from jax.experimental.pallas import tpu as pltpu

_LANE = 128      # vreg lane width
_SUBLANE = 8     # vreg sublane count (f32)


def _round_up(n: int, m: int) -> int:
    return ((n + m - 1) // m) * m


def _fused_mlp_kernel(x_ref, *refs, n_layers: int):
    """Whole MLP in one kernel. refs = (w1, b1, ..., wn, bn, o_ref).

    x_ref:   (Bp, 128*)  bf16 activations (lane/sublane padded)
    w_i:     (Kp, Np)    bf16 weights (padded, stored as in x out)
    b_i:     (1, Np)     f32 bias
    o_ref:   (Bp, Np_last) f32 output
    """
    wb_refs = refs[:-1]
    o_ref = refs[-1]

    h = x_ref[...]                                     # bf16
    for i in range(n_layers):
        w = wb_refs[2 * i][...]                        # bf16
        b = wb_refs[2 * i + 1][...]                    # f32
        # bf16 x bf16 -> f32 accumulate on the MXU.
        acc = jnp.dot(h, w, preferred_element_type=jnp.float32) + b
        if i < n_layers - 1:
            acc = jnp.maximum(acc, 0.0)                # f32 VPU path (v5e-safe)
            # Dropout(0.1): identity in inference mode (see TODO above).
            h = acc.astype(jnp.bfloat16)               # bf16 operand for next MXU pass
        else:
            h = acc
    o_ref[...] = h.astype(o_ref.dtype)


def mlp_forward(x, params):
    """Matches MLP.forward: flatten to (B, -1), fused Linear/ReLU stack.

    Pads batch to a multiple of 8 sublanes and every feature dim to a multiple
    of 128 lanes (zeros), runs one fused pallas_call, then slices back.
    """
    batch = x.shape[0]
    h = x.reshape(batch, -1).astype(jnp.float32)
    in_dim = h.shape[1]
    n_layers = len(params)
    out_dim = params[-1][0].shape[1]

    bp = _round_up(batch, _SUBLANE)
    kp = _round_up(in_dim, _LANE)
    h = jnp.pad(h, ((0, bp - batch), (0, kp - in_dim))).astype(jnp.bfloat16)

    # Zero-pad weights/biases to lane-dense shapes; padded K rows multiply
    # padded zero lanes of the activation, so results are unchanged.
    flat_wb = []
    prev = kp
    for w, b in params:
        fin, fout = w.shape
        fp = _round_up(fout, _LANE)
        w_pad = jnp.pad(w, ((0, prev - fin), (0, fp - fout))).astype(jnp.bfloat16)
        b_pad = jnp.pad(b, ((0, 0), (0, fp - fout))).astype(jnp.float32)
        flat_wb.extend((w_pad, b_pad))
        prev = fp

    kernel = functools.partial(_fused_mlp_kernel, n_layers=n_layers)
    vmem_spec = pl.BlockSpec(memory_space=pltpu.MemorySpace.VMEM)

    out_padded = pl.pallas_call(
        kernel,
        out_shape=jax.ShapeDtypeStruct((bp, prev), jnp.float32),
        in_specs=[vmem_spec] * (1 + 2 * n_layers),
        out_specs=vmem_spec,
    )(h, *flat_wb)

    return out_padded[:batch, :out_dim]


def init_mlp_params(key, layer_dims):
    """Deterministic init mimicking nn.Linear default (U[-1/sqrt(fan_in), ...])."""
    params = []
    for i in range(len(layer_dims) - 1):
        fan_in, fan_out = layer_dims[i], layer_dims[i + 1]
        key, kw, kb = jax.random.split(key, 3)
        bound = 1.0 / jnp.sqrt(jnp.float32(fan_in))
        # Stored as (in, out) — W^T relative to PyTorch's (out, in).
        w = jax.random.uniform(kw, (fan_in, fan_out), jnp.float32, -bound, bound)
        b = jax.random.uniform(kb, (1, fan_out), jnp.float32, -bound, bound)
        params.append((w, b))
    return params


if __name__ == "__main__":
    key = jax.random.PRNGKey(0)
    k_x, k_p = jax.random.split(key)

    # Input (2, 4, 4, 4) flattens to (2, 64) == layer_dims[0].
    layer_dims = [64, 32, 16, 8]
    x = jax.random.normal(k_x, (2, 4, 4, 4), dtype=jnp.float32)
    params = init_mlp_params(k_p, layer_dims)

    out = mlp_forward(x, params)
    out = jax.block_until_ready(out)

    # Cross-check against plain-JAX f32 reference (eval-mode dropout == identity).
    # Tolerance loosened because the kernel uses bf16 MXU operands.
    h = x.reshape(x.shape[0], -1)
    for i, (w, b) in enumerate(params):
        h = h @ w + b
        if i < len(params) - 1:
            h = jnp.maximum(h, 0.0)
    assert out.shape == (2, layer_dims[-1])
    assert jnp.allclose(out, h, atol=2e-2, rtol=2e-2)

    print("KERNEL_OK")
</pallas_src>

<mosaic_0001>
module attributes {stable_mosaic.version = 11 : i64} {
  func.func @_fused_mlp_kernel(%arg0: memref<8x128xbf16, #tpu.memory_space<vmem>>, %arg1: memref<128x128xbf16, #tpu.memory_space<vmem>>, %arg2: memref<1x128xf32, #tpu.memory_space<vmem>>, %arg3: memref<128x128xbf16, #tpu.memory_space<vmem>>, %arg4: memref<1x128xf32, #tpu.memory_space<vmem>>, %arg5: memref<128x128xbf16, #tpu.memory_space<vmem>>, %arg6: memref<1x128xf32, #tpu.memory_space<vmem>>, %arg7: memref<8x128xf32, #tpu.memory_space<vmem>>) attributes {dimension_semantics = [], scalar_prefetch = 0 : i64, scratch_operands = 0 : i64, tpu.core_type = #tpu.core_type<tc>} {
    %c0 = arith.constant 0 : index
    %c0_0 = arith.constant 0 : index
    %0 = vector.load %arg0[%c0, %c0_0] : memref<8x128xbf16, #tpu.memory_space<vmem>>, vector<8x128xbf16>
    %c0_1 = arith.constant 0 : index
    %c0_2 = arith.constant 0 : index
    %1 = vector.load %arg1[%c0_1, %c0_2] : memref<128x128xbf16, #tpu.memory_space<vmem>>, vector<128x128xbf16>
    %c0_3 = arith.constant 0 : index
    %c0_4 = arith.constant 0 : index
    %2 = vector.load %arg2[%c0_3, %c0_4] : memref<1x128xf32, #tpu.memory_space<vmem>>, vector<1x128xf32>
    %cst = arith.constant dense<0.000000e+00> : vector<8x128xf32>
    %3 = tpu.matmul %0, %1, %cst {dimension_numbers = #tpu.dot_dimension_numbers<[1], [0], [0], [1], [0, 0, 1, 1], [], []>} : vector<8x128xbf16>, vector<128x128xbf16>, vector<8x128xf32> -> vector<8x128xf32>
    %4 = vector.broadcast %2 : vector<1x128xf32> to vector<8x128xf32>
    %5 = arith.addf %3, %4 : vector<8x128xf32>
    %cst_5 = arith.constant 0.000000e+00 : f32
    %6 = vector.broadcast %cst_5 : f32 to vector<8x128xf32>
    %7 = arith.maximumf %5, %6 : vector<8x128xf32>
    %8 = arith.truncf %7 : vector<8x128xf32> to vector<8x128xbf16>
    %c0_6 = arith.constant 0 : index
    %c0_7 = arith.constant 0 : index
    %9 = vector.load %arg3[%c0_6, %c0_7] : memref<128x128xbf16, #tpu.memory_space<vmem>>, vector<128x128xbf16>
    %c0_8 = arith.constant 0 : index
    %c0_9 = arith.constant 0 : index
    %10 = vector.load %arg4[%c0_8, %c0_9] : memref<1x128xf32, #tpu.memory_space<vmem>>, vector<1x128xf32>
    %cst_10 = arith.constant dense<0.000000e+00> : vector<8x128xf32>
    %11 = tpu.matmul %8, %9, %cst_10 {dimension_numbers = #tpu.dot_dimension_numbers<[1], [0], [0], [1], [0, 0, 1, 1], [], []>} : vector<8x128xbf16>, vector<128x128xbf16>, vector<8x128xf32> -> vector<8x128xf32>
    %12 = vector.broadcast %10 : vector<1x128xf32> to vector<8x128xf32>
    %13 = arith.addf %11, %12 : vector<8x128xf32>
    %cst_11 = arith.constant 0.000000e+00 : f32
    %14 = vector.broadcast %cst_11 : f32 to vector<8x128xf32>
    %15 = arith.maximumf %13, %14 : vector<8x128xf32>
    %16 = arith.truncf %15 : vector<8x128xf32> to vector<8x128xbf16>
    %c0_12 = arith.constant 0 : index
    %c0_13 = arith.constant 0 : index
    %17 = vector.load %arg5[%c0_12, %c0_13] : memref<128x128xbf16, #tpu.memory_space<vmem>>, vector<128x128xbf16>
    %c0_14 = arith.constant 0 : index
    %c0_15 = arith.constant 0 : index
    %18 = vector.load %arg6[%c0_14, %c0_15] : memref<1x128xf32, #tpu.memory_space<vmem>>, vector<1x128xf32>
    %cst_16 = arith.constant dense<0.000000e+00> : vector<8x128xf32>
    %19 = tpu.matmul %16, %17, %cst_16 {dimension_numbers = #tpu.dot_dimension_numbers<[1], [0], [0], [1], [0, 0, 1, 1], [], []>} : vector<8x128xbf16>, vector<128x128xbf16>, vector<8x128xf32> -> vector<8x128xf32>
    %20 = vector.broadcast %18 : vector<1x128xf32> to vector<8x128xf32>
    %21 = arith.addf %19, %20 : vector<8x128xf32>
    %c0_17 = arith.constant 0 : index
    %c0_18 = arith.constant 0 : index
    %22 = vector.load %arg7[%c0_17, %c0_18] : memref<8x128xf32, #tpu.memory_space<vmem>>, vector<8x128xf32>
    tpu.vector_store %arg7[%c0_17, %c0_18], %21 {strides = array<i32>} : memref<8x128xf32, #tpu.memory_space<vmem>>, vector<8x128xf32>,
    return
  }
}

</mosaic_0001>

<bundles_post_ra>
// kernel: tpu_custom_call.1
= control target key start
LH: loop header
LB: loop body
LE: loop exit
PB: predicated region body
PF: predicated region fallthrough
CT: control target
= control target key end

     0   :  { %12 = vsyncpa [#allocation3], 0  ;;  %s685_s0 = inlined_call_operand.hbm [shape: bf16[8,128], index: 0, kind: input, shape index: {}]   ;;  %s686_s1 = inlined_call_operand.hbm [shape: bf16[128,128], index: 1, kind: input, shape index: {}]   ;;  %s687_s2 = inlined_call_operand.vmem [shape: f32[1,128], index: 2, kind: input, shape index: {}]   ;;  %s688_s3 = inlined_call_operand.hbm [shape: bf16[128,128], index: 3, kind: input, shape index: {}]   ;;  %s689_s4 = inlined_call_operand.vmem [shape: f32[1,128], index: 4, kind: input, shape index: {}]   ;;  %s690_s5 = inlined_call_operand.hbm [shape: bf16[128,128], index: 5, kind: input, shape index: {}]   ;;  %s691_s6 = inlined_call_operand.vmem [shape: f32[1,128], index: 6, kind: input, shape index: {}]   ;;  %s692_s7 = inlined_call_operand.hbm [shape: f32[8,128], index: 7, kind: output, shape index: {}]  }
   0x1   :  { %13 = vsyncpa [#allocation6], 0 }
   0x2   :  { %14 = vsyncpa [#allocation9], 0  ;;  %s31_s26 = sshll.u32 %s686_s1, 4  ;;  %s32_s26 = int_to_ptr.hbm [resolvable:$true] %s31_s26 }
   0x3   :  { %15 = vsyncpa [#allocation4], 0  ;;  %s614_s27 = smov [#allocation5]   ;;  %s21_s8 = sshll.u32 %s685_s0, 4  ;;  %s22_s8 = int_to_ptr.hbm [resolvable:$true] %s21_s8 }
   0x4   :  { %s33_s28 = sshll.u32 %s614_s27, 4  ;;  %s615_s9 = smov 64   ;;  %s34_s28 = int_to_ptr.vmem [resolvable:$true] %s33_s28 }
   0x5   :  { %s616_s10 = smov 4   ;;  %s617_s11 = smov [#allocation2]  }
   0x6   :  { %39 = dma.hbm_to_vmem [thread:$0]  %s32_s26, 1024, %s34_s28, [#allocation6], %s615_s9, %s615_s9, %s616_s10  }
   0x7   :  { %s23_s12 = sshll.u32 %s617_s11, 4  ;;  %s46_s15 = sshll.u32 %s688_s3, 4  ;;  %s24_s12 = int_to_ptr.vmem [resolvable:$true] %s23_s12  ;;  %s47_s15 = int_to_ptr.hbm [resolvable:$true] %s46_s15 }
   0x8   :  { %26 = dma.hbm_to_vmem [thread:$0]  %s22_s8, 64, %s24_s12, [#allocation3]  }
   0x9   :  { %s61_s17 = sshll.u32 %s690_s5, 4  ;;  %s618_s18 = smov [#allocation7]   ;;  %s62_s17 = int_to_ptr.hbm [resolvable:$true] %s61_s17 }
   0xa   :  { %s48_s19 = sshll.u32 %s618_s18, 4  ;;  %s619_s0 = smov [#allocation8]   ;;  %s49_s19 = int_to_ptr.vmem [resolvable:$true] %s48_s19 }
   0xb   :  { %54 = dma.hbm_to_vmem [thread:$0]  %s47_s15, 1024, %s49_s19, [#allocation6], %s615_s9, %s615_s9, %s616_s10  }
   0xc   :  { %s63_s20 = sshll.u32 %s619_s0, 4  ;;  %s64_s20 = int_to_ptr.vmem [resolvable:$true] %s63_s20 }
   0xd   :  { %69 = dma.hbm_to_vmem [thread:$0]  %s62_s17, 1024, %s64_s20, [#allocation9], %s615_s9, %s615_s9, %s616_s10  }
   0xe   :  { %606 = dma.done.wait [#allocation3], 64  }
   0xf   :  { %607 = vsyncadd [#allocation3], 4294967232 }
  0x10   :  { %608 = dma.done.wait [#allocation6], 2048  }
  0x11   :  { %609 = vsyncadd [#allocation6], 4294965248 }
  0x12   :  { %610 = dma.done.wait [#allocation9], 1024  }
  0x13   :  { %611 = vsyncadd [#allocation9], 4294966272  ;;  %v459_v0 = vld [vmem:[#allocation5 + $0x38] sm:$0xff]  ;;  %v458_v1 = vld [vmem:[#allocation5 + $0x30] sm:$0xff]  ;;  %s620_s24 = smov [#allocation10]   ;;  %s344_s28 = sshll.u32 %s692_s7, 4  ;;  %s345_s28 = int_to_ptr.hbm [resolvable:$true] %s344_s28 }
  0x14   :  { %157 = vmatpush.bf16.msra.mxu0 %v459_v0  ;;  %v467_v2 = vld [vmem:[#allocation7 + $0x38] sm:$0xff]  ;;  %v466_v3 = vld [vmem:[#allocation7 + $0x30] sm:$0xff]  ;;  %v457_v4 = vld [vmem:[#allocation5 + $0x28] sm:$0xff]  ;;  %s342_s25 = sshll.u32 %s620_s24, 4  ;;  %s343_s25 = int_to_ptr.vmem [resolvable:$true] %s342_s25 }
  0x15   :  { %240 = vmatpush.bf16.msra.mxu1 %v467_v2  ;;  %v465_v5 = vld [vmem:[#allocation7 + $0x28] sm:$0xff]  ;;  %v456_v6 = vld [vmem:[#allocation5 + $0x20] sm:$0xff]  ;;  %v455_v8 = vld [vmem:[#allocation5 + $0x18] sm:$0xff] }
  0x16   :  { %v464_v7 = vld [vmem:[#allocation7 + $0x20] sm:$0xff]  ;;  %v463_v9 = vld [vmem:[#allocation7 + $0x18] sm:$0xff]  ;;  %v454_v10 = vld [vmem:[#allocation5 + $0x10] sm:$0xff] }
  0x17   :  { %v462_v11 = vld [vmem:[#allocation7 + $0x10] sm:$0xff]  ;;  %v453_v12 = vld [vmem:[#allocation5 + $0x8] sm:$0xff]  ;;  %v452_v13 = vld [vmem:[#allocation5] sm:$0xff] }
  0x18   :  { %158 = vmatpush.bf16.msra.mxu0 %v458_v1  ;;  %v88_v14 = vld [vmem:[#allocation2] sm:$0xf]  ;;  %v461_v15 = vld [vmem:[#allocation7 + $0x8] sm:$0xff]  ;;  %v460_v16 = vld [vmem:[#allocation7] sm:$0xff] }
  0x19   :  { %241 = vmatpush.bf16.msra.mxu1 %v466_v3  ;;  %v475_v17 = vld [vmem:[#allocation8 + $0x38] sm:$0xff]  ;;  %v474_v18 = vld [vmem:[#allocation8 + $0x30] sm:$0xff]  ;;  %v473_v19 = vld [vmem:[#allocation8 + $0x28] sm:$0xff] }
  0x1a   :  { %323 = vmatpush.bf16.msra.mxu2 %v475_v17  ;;  %v472_v20 = vld [vmem:[#allocation8 + $0x20] sm:$0xff]  ;;  %v471_v21 = vld [vmem:[#allocation8 + $0x18] sm:$0xff]  ;;  %v470_v22 = vld [vmem:[#allocation8 + $0x10] sm:$0xff] }
  0x1b   :  { %v483_v23 = vld [vmem:[%s687_s2] ss:$0 sm:$0xff]  ;;  %v469_v29 = vld [vmem:[#allocation8 + $0x8] sm:$0xff]  ;;  %v468_v30 = vld [vmem:[#allocation8] sm:$0xff] }
  0x1c   :  { %159 = vmatpush.bf16.msra.mxu0 %v457_v4  ;;  %v484_v31 = vld [vmem:[%s689_s4] ss:$0 sm:$0xff] }
  0x1d   :  { %242 = vmatpush.bf16.msra.mxu1 %v465_v5  ;;  %v485_v37 = vld [vmem:[%s691_s6] ss:$0 sm:$0xff] }
  0x1e   :  { %324 = vmatpush.bf16.msra.mxu2 %v474_v18 }
  0x20   :  { %160 = vmatpush.bf16.msra.mxu0 %v456_v6 }
  0x21   :  { %243 = vmatpush.bf16.msra.mxu1 %v464_v7 }
  0x22   :  { %325 = vmatpush.bf16.msra.mxu2 %v473_v19 }
  0x24   :  { %161 = vmatpush.bf16.msra.mxu0 %v455_v8 }
  0x25   :  { %244 = vmatpush.bf16.msra.mxu1 %v463_v9 }
  0x26   :  { %326 = vmatpush.bf16.msra.mxu2 %v472_v20 }
  0x28   :  { %162 = vmatpush.bf16.msra.mxu0 %v454_v10 }
  0x29   :  { %245 = vmatpush.bf16.msra.mxu1 %v462_v11 }
  0x2a   :  { %327 = vmatpush.bf16.msra.mxu2 %v471_v21 }
  0x2c   :  { %163 = vmatpush.bf16.msra.mxu0 %v453_v12 }
  0x2d   :  { %246 = vmatpush.bf16.msra.mxu1 %v461_v15 }
  0x2e   :  { %328 = vmatpush.bf16.msra.mxu2 %v470_v22 }
  0x30   :  { %164 = vmatpush.bf16.msra.mxu0 %v452_v13 }
  0x31   :  { %247 = vmatpush.bf16.msra.mxu1 %v460_v16 }
  0x32   :  { %329 = vmatpush.bf16.msra.mxu2 %v469_v29 }
  0x33   :  { %165 = vmatmul.bf16.vlgmr.msra.gmra.mxu0 %v88_v14 }
  0x36   :  { %330 = vmatpush.bf16.msra.mxu2 %v468_v30 }
  0xb0   :  { %v166_v24 = vpop.f32.mrf.mxu0 }
  0xb1   :  { %v167_v25 = vadd.f32 %v483_v23, %v166_v24 }
  0xb3   :  { %v170_v26 = vmax.f32 %v167_v25, 0.0 }
  0xb5   :  { %v171_v27 = vpack.c.bf16 %v170_v26, %v170_v26 }
  0xb7   :  { %248 = vmatmul.bf16.vlgmr.msra.gmra.mxu1 %v171_v27 }
  0xb8   :  { %v168_v28 = vpop.f32.mrf.mxu0 }
 0x134   :  { %v249_v32 = vpop.f32.mrf.mxu1 }
 0x135   :  { %v250_v33 = vadd.f32 %v484_v31, %v249_v32 }
 0x137   :  { %v253_v34 = vmax.f32 %v250_v33, 0.0 }
 0x139   :  { %v254_v35 = vpack.c.bf16 %v253_v34, %v253_v34 }
 0x13b   :  { %331 = vmatmul.bf16.vlgmr.msra.gmra.mxu2 %v254_v35 }
 0x13c   :  { %v251_v36 = vpop.f32.mrf.mxu1 }
 0x1be   :  { %v332_v38 = vpop.f32.mrf.mxu2 }
 0x1bf   :  { %v333_v39 = vadd.f32 %v485_v37, %v332_v38 }
 0x1c1   :  { %336 = vst [vmem:[#allocation10] sm:$0xff] %v333_v39 }
 0x1c2   :  { %347 = dma.vmem_to_hbm [thread:$0]  %s343_s25, 128, %s345_s28, [#allocation4]  }
 0x1c6   :  { %v334_v40 = vpop.f32.mrf.mxu2 }
 0x1c7   :  { %612 = dma.done.wait [#allocation4], 128  }
 0x1c8   :  { %613 = vsyncadd [#allocation4], 4294967168 }
 0x1c9   :  { %352 = vsyncpa [#allocation3], 1 }
 0x1ca   :  { %353 = vsyncpa [#allocation6], 1 }
 0x1cb   :  { %354 = vsyncpa [#allocation9], 1 }
 0x1cc   :  { %355 = vsyncpa [#allocation4], 1 }

</bundles_post_ra>
